<compile_context>
chip_gen: v7x
topology: tpu7x:2x2x1
jax: 0.10.0
libtpu: 0.0.40
codegen_flags: <defaults>
</compile_context>

<pallas_src>
import functools

import jax
import jax.numpy as jnp
from jax.experimental import pallas as pl
from jax.experimental.pallas import tpu as pltpu

_LANE = 128          # lane width (last dim of the dense block)
_SUBLANE = 8         # sublane granularity (second-minor dim multiple)
_MAX_ROWS = 512      # rows (of 128 lanes) per block -> 64K elems/channel/step


def _round_up(x: int, m: int) -> int:
    return ((x + m - 1) // m) * m


def _p_kernel(i_ref, q_ref, r_ref, o_ref, *, gamma):
    # i_ref/r_ref/o_ref: (1, C, TS, 128) VMEM tiles; q_ref: (1, 1, TS, 128).
    q = q_ref[...]
    inv = 1.0 / (gamma + q * q)      # one exact reciprocal per Q tile, reused for all C
    o_ref[...] = (i_ref[...] * q + gamma * r_ref[...]) * inv


def p_solver(I, Q, R, gamma):
    """Pallas implementation of module P: (I*Q + gamma*R) / (gamma + Q*Q).

    I, R: (N, C, H, W) float32
    Q:    (N, 1, H, W) float32 (broadcast over channels)
    gamma: python float (compile-time constant)
    """
    N, C, H, W = I.shape
    assert Q.shape == (N, 1, H, W)
    assert R.shape == I.shape

    HW = H * W

    # Dense (rows, 128) spatial layout; pad rows so the block divides exactly.
    rows = pl.cdiv(HW, _LANE)
    ts = min(_MAX_ROWS, _round_up(rows, _SUBLANE))   # rows per block, multiple of 8
    rows_pad = _round_up(rows, ts)
    hw_pad = rows_pad * _LANE
    num_row_tiles = rows_pad // ts

    i_flat = I.reshape(N, C, HW)
    q_flat = Q.reshape(N, 1, HW)
    r_flat = R.reshape(N, C, HW)

    if hw_pad != HW:
        pad = hw_pad - HW
        i_flat = jnp.pad(i_flat, ((0, 0), (0, 0), (0, pad)))
        # Pad Q with 1.0 so the padded denominator is never zero (padded
        # outputs are sliced off below anyway).
        q_flat = jnp.pad(q_flat, ((0, 0), (0, 0), (0, pad)), constant_values=1.0)
        r_flat = jnp.pad(r_flat, ((0, 0), (0, 0), (0, pad)))

    i4 = i_flat.reshape(N, C, rows_pad, _LANE)
    q4 = q_flat.reshape(N, 1, rows_pad, _LANE)
    r4 = r_flat.reshape(N, C, rows_pad, _LANE)

    kernel = functools.partial(_p_kernel, gamma=float(gamma))

    out4 = pl.pallas_call(
        kernel,
        out_shape=jax.ShapeDtypeStruct((N, C, rows_pad, _LANE), I.dtype),
        grid=(N, num_row_tiles),
        in_specs=[
            pl.BlockSpec((1, C, ts, _LANE), lambda n, t: (n, 0, t, 0)),  # I
            pl.BlockSpec((1, 1, ts, _LANE), lambda n, t: (n, 0, t, 0)),  # Q (once/tile)
            pl.BlockSpec((1, C, ts, _LANE), lambda n, t: (n, 0, t, 0)),  # R
        ],
        out_specs=pl.BlockSpec((1, C, ts, _LANE), lambda n, t: (n, 0, t, 0)),
        compiler_params=pltpu.CompilerParams(
            dimension_semantics=("parallel", "parallel")
        ),
    )(i4, q4, r4)

    out = out4.reshape(N, C, hw_pad)[..., :HW].reshape(N, C, H, W)
    return out


if __name__ == "__main__":
    key = jax.random.PRNGKey(0)

    def _check(N, C, H, W, gamma, key):
        k1, k2, k3 = jax.random.split(key, 3)
        I = jax.random.uniform(k1, (N, C, H, W), dtype=jnp.float32)        # input image
        Q = jax.random.uniform(k2, (N, 1, H, W), dtype=jnp.float32) + 0.1  # illumination
        R = jax.random.uniform(k3, (N, C, H, W), dtype=jnp.float32)        # reflectance
        out = jax.block_until_ready(p_solver(I, Q, R, gamma))
        ref = (I * Q + gamma * R) / (gamma + Q * Q)
        assert out.shape == (N, C, H, W)
        assert jnp.allclose(out, ref, atol=1e-6, rtol=1e-6)

    k1, k2 = jax.random.split(key)
    # Standard RGB batch, spatial divisible by the lane width.
    _check(2, 3, 16, 16, 0.5, k1)
    # Odd spatial extent to exercise the padding path (HW not a multiple of 128).
    _check(1, 3, 10, 13, 0.3, k2)

    print("KERNEL_OK")
</pallas_src>

<mosaic_0001>
module attributes {stable_mosaic.version = 11 : i64} {
  func.func @_p_kernel(%arg0: i32, %arg1: i32, %arg2: memref<1x3x8x128xf32, #tpu.memory_space<vmem>>, %arg3: memref<1x1x8x128xf32, #tpu.memory_space<vmem>>, %arg4: memref<1x3x8x128xf32, #tpu.memory_space<vmem>>, %arg5: memref<1x3x8x128xf32, #tpu.memory_space<vmem>>) attributes {dimension_semantics = [#tpu.dimension_semantics<parallel>, #tpu.dimension_semantics<parallel>], iteration_bounds = array<i64: 2, 1>, scalar_prefetch = 0 : i64, scratch_operands = 0 : i64, tpu.core_type = #tpu.core_type<tc>, window_params = [{transform_indices = @transform_0, window_bounds = array<i64: 1, 3, 8, 128>}, {transform_indices = @transform_1, window_bounds = array<i64: 1, 1, 8, 128>}, {transform_indices = @transform_2, window_bounds = array<i64: 1, 3, 8, 128>}, {transform_indices = @transform_3, window_bounds = array<i64: 1, 3, 8, 128>}]} {
    %c0 = arith.constant 0 : index
    %c0_0 = arith.constant 0 : index
    %c0_1 = arith.constant 0 : index
    %c0_2 = arith.constant 0 : index
    %0 = vector.load %arg3[%c0, %c0_0, %c0_1, %c0_2] : memref<1x1x8x128xf32, #tpu.memory_space<vmem>>, vector<1x1x8x128xf32>
    %1 = arith.mulf %0, %0 : vector<1x1x8x128xf32>
    %cst = arith.constant 5.000000e-01 : f32
    %2 = vector.broadcast %cst : f32 to vector<1x1x8x128xf32>
    %3 = arith.addf %2, %1 : vector<1x1x8x128xf32>
    %cst_3 = arith.constant 1.000000e+00 : f32
    %4 = vector.broadcast %cst_3 : f32 to vector<1x1x8x128xf32>
    %5 = arith.divf %4, %3 : vector<1x1x8x128xf32>
    %c0_4 = arith.constant 0 : index
    %c0_5 = arith.constant 0 : index
    %c0_6 = arith.constant 0 : index
    %c0_7 = arith.constant 0 : index
    %6 = vector.load %arg2[%c0_4, %c0_5, %c0_6, %c0_7] : memref<1x3x8x128xf32, #tpu.memory_space<vmem>>, vector<1x3x8x128xf32>
    %7 = vector.broadcast %0 : vector<1x1x8x128xf32> to vector<1x3x8x128xf32>
    %8 = arith.mulf %6, %7 : vector<1x3x8x128xf32>
    %c0_8 = arith.constant 0 : index
    %c0_9 = arith.constant 0 : index
    %c0_10 = arith.constant 0 : index
    %c0_11 = arith.constant 0 : index
    %9 = vector.load %arg4[%c0_8, %c0_9, %c0_10, %c0_11] : memref<1x3x8x128xf32, #tpu.memory_space<vmem>>, vector<1x3x8x128xf32>
    %cst_12 = arith.constant 5.000000e-01 : f32
    %10 = vector.broadcast %cst_12 : f32 to vector<1x3x8x128xf32>
    %11 = arith.mulf %10, %9 : vector<1x3x8x128xf32>
    %12 = arith.addf %8, %11 : vector<1x3x8x128xf32>
    %13 = vector.broadcast %5 : vector<1x1x8x128xf32> to vector<1x3x8x128xf32>
    %14 = arith.mulf %12, %13 : vector<1x3x8x128xf32>
    %c0_13 = arith.constant 0 : index
    %c0_14 = arith.constant 0 : index
    %c0_15 = arith.constant 0 : index
    %c0_16 = arith.constant 0 : index
    %15 = vector.load %arg5[%c0_13, %c0_14, %c0_15, %c0_16] : memref<1x3x8x128xf32, #tpu.memory_space<vmem>>, vector<1x3x8x128xf32>
    tpu.vector_store %arg5[%c0_13, %c0_14, %c0_15, %c0_16], %14 {strides = array<i32>} : memref<1x3x8x128xf32, #tpu.memory_space<vmem>>, vector<1x3x8x128xf32>,
    return
  }
  func.func @transform_0(%arg0: i32, %arg1: i32) -> (i32, i32, i32, i32) {
    %c0_i32 = arith.constant 0 : i32
    %c0_i32_0 = arith.constant 0 : i32
    %c0_i32_1 = arith.constant 0 : i32
    return %arg0, %c0_i32, %arg1, %c0_i32_0 : i32, i32, i32, i32
  }
  func.func @transform_1(%arg0: i32, %arg1: i32) -> (i32, i32, i32, i32) {
    %c0_i32 = arith.constant 0 : i32
    %c0_i32_0 = arith.constant 0 : i32
    %c0_i32_1 = arith.constant 0 : i32
    return %arg0, %c0_i32, %arg1, %c0_i32_0 : i32, i32, i32, i32
  }
  func.func @transform_2(%arg0: i32, %arg1: i32) -> (i32, i32, i32, i32) {
    %c0_i32 = arith.constant 0 : i32
    %c0_i32_0 = arith.constant 0 : i32
    %c0_i32_1 = arith.constant 0 : i32
    return %arg0, %c0_i32, %arg1, %c0_i32_0 : i32, i32, i32, i32
  }
  func.func @transform_3(%arg0: i32, %arg1: i32) -> (i32, i32, i32, i32) {
    %c0_i32 = arith.constant 0 : i32
    %c0_i32_0 = arith.constant 0 : i32
    %c0_i32_1 = arith.constant 0 : i32
    return %arg0, %c0_i32, %arg1, %c0_i32_0 : i32, i32, i32, i32
  }
}

</mosaic_0001>

<bundles_post_ra>
// kernel: tpu_custom_call.1
= control target key start
LH: loop header
LB: loop body
LE: loop exit
PB: predicated region body
PF: predicated region fallthrough
CT: control target
= control target key end

     0   :  { %s1028_s0 = inlined_call_operand.hbm [shape: f32[2,3,8,128], index: 0, kind: input, shape index: {}]   ;;  %s1029_s1 = inlined_call_operand.hbm [shape: f32[2,1,8,128], index: 1, kind: input, shape index: {}]   ;;  %s1030_s2 = inlined_call_operand.hbm [shape: f32[2,3,8,128], index: 2, kind: input, shape index: {}]   ;;  %s1031_s3 = inlined_call_operand.hbm [shape: f32[2,3,8,128], index: 3, kind: output, shape index: {}]  }
   0x1   :  { %1036 = sst [smem:[#allocation15_spill]] %s1029_s1 }
   0x2   :  { %8 = vsyncpa [#allocation3], 0 }
   0x3   :  { %10 = vsyncpa [#allocation3 + $0x1], 0 }
   0x4   :  { %11 = vsyncpa [#allocation6], 0 }
   0x5   :  { %13 = vsyncpa [#allocation6 + $0x1], 0 }
   0x6   :  { %14 = vsyncpa [#allocation4], 0 }
   0x7   :  { %16 = vsyncpa [#allocation4 + $0x1], 0  ;;  %s761_s12 = smov 0   ;;  %s763_s13 = smov 0  }
   0x8   :  { %s765_s14 = smov 0   ;;  %s767_s15 = smov 0  }
   0x9   :  { %s769_s16 = smov 0   ;;  %s771_s17 = smov 0  }
   0xa LB: > { %1037 = sst [smem:[#allocation12_spill]] %s727_s16  ;;  %s792_s18 = sadd.s32 4294967295, %s731_s17   ;;  %s731_s17 = sphi %s771_s17, %s22_s17   ;;  %s727_s16 = sphi %s769_s16, %s1055_s16   ;;  %s723_s15 = sphi %s767_s15, %s1054_s15   ;;  %s719_s14 = sphi %s765_s14, %s1058_s14   ;;  %s715_s13 = sphi %s763_s13, %s1057_s13   ;;  %s711_s12 = sphi %s761_s12, %s1056_s12  }
   0xb   : > { %s459_s19 = sadd.s32 4294967294, %s731_s17   ;;  %s34_s20 = sadd.s32 1, %s727_s16 }
   0xc   : > { %s43_s21 = sadd.s32 1, %s719_s14  ;;  %p36_p0 = scmp.ge.s32.totalorder %s34_s20, 2 }
   0xd   : > { %p50_p1 = scmp.ne.s32.totalorder %s719_s14, %s715_s13  ;;  %p51_p2 = scmp.eq.s32.totalorder %s731_s17, 0 }
   0xe   : > { %p56_p3 = scmp.ne.s32.totalorder %s715_s13, %s711_s12  ;;  %s1060_s20 = smov (%p36_p0, %s34_s20), 0 }
   0xf   : > { %1038 = sst [smem:[#allocation13_spill]] %s1060_s20  ;;  %p804_p4 = por %p51_p2, %p50_p1 }
  0x10   : > { %p57_p5 = scmp.eq.s32.totalorder %s792_s18, 0  ;;  %s38_s23 = ssub.s32 %s727_s16, %s1060_s20 }
  0x11   : > { %p138_p6 = scmp.eq.s32.totalorder %s792_s18, 1  ;;  %p41_p7 = scmp.eq.s32.totalorder %s38_s23, 0 }
  0x12   : > { %p812_p8 = por %p57_p5, %p56_p3  ;;  %p144_p10 = scmp.eq.s32.totalorder %s459_s19, 1 }
  0x13   : > { %p816_p9 = por %p138_p6, %p50_p1  ;;  %p499_p13 = scmp.lt.s32.totalorder %s731_s17, 2 }
  0x14   : > { %s1040_s24 = scalar_select %p812_p8, 1, 0 }
  0x15   : > { %s1041_s25 = scalar_select %p816_p9, 1, 0 }
  0x16   : > { %s821_s26 = scalar_select %p41_p7, %s719_s14, %s43_s21  }
  0x17   : > { %p823_p11 = por %p144_p10, %p56_p3  ;;  %s830_s28 = sand.u32 1, %s719_s14  }
  0x18   : > { %1042 = sst [smem:[#allocation14_spill]] %s821_s26  ;;  %s471_s29 = smul.u32 24, %s830_s28 }
  0x19   : > { %s1043_s27 = scalar_select %p823_p11, 1, 0 }
  0x1a   : > { %s186_s30 = sand.u32 1, %s731_s17   ;;  %p836_p0 = pnand %p499_p13, %p804_p4 }
  0x1b   : > { %s463_s5 = sshll.u32 %s830_s28, 3  ;;  %s464_s6 = sshll.u32 %s727_s16, 7 }
  0x1c   : > { %s1045_s1 = sld [smem:[#allocation15_spill]]  ;;  %s190_s10 = scalar_lea.vmem [#allocation5], %s463_s5 }
  0x1d   : > { %s198_s11 = sshll.u32 %s190_s10, 4  ;;  %s849_s19 = scalar_lea.sflag [#allocation6], %s186_s30  ;;  %s847_s11 = int_to_ptr.vmem [resolvable:$true] %s198_s11 }
  0x1e   : > { %p855_p2 = pneg %p836_p0 }
  0x22   : > { %s845_s9 = scalar_lea.hbm %s1045_s1, %s464_s6  ;;  %s560_s5 = scalar_lea.hbm %s1045_s1, 256 }
  0x23   : > { %s555_s21 = scalar_lea.hbm %s845_s9, 128  ;;  %p561_p5 = scmp.lt.u32.totalorder %s845_s9, %s1045_s1 }
  0x24   : > { %p556_p1 = scmp.ne.s32.totalorder %s845_s9, %s555_s21  ;;  %p562_p6 = scmp.lt.u32.totalorder %s560_s5, %s555_s21 }
  0x25   : > { %p564_p10 = scmp.lt.u32.totalorder %s555_s21, %s845_s9 }
  0x26   : > { %p558_p3 = pnand %p855_p2, %p556_p1  ;;  %p563_p7 = por %p562_p6, %p561_p5 }
  0x28   : > { %p559_p4 = pneg %p558_p3  ;;  %p565_p13 = por %p564_p10, %p563_p7 }
  0x2a   : > { %p566_p12 = pnand %p565_p13, %p559_p4 }
  0x2c   : > { %569 = shalt.err (!%p566_p12)
}
  0x2d   : > { %s570_s30 = scalar_lea.vmem %s847_s11, 128  ;;  %s733_s10 = smov [#allocation5]  }
  0x2e   : > { %p571_p1 = scmp.ne.s32.totalorder %s847_s11, %s570_s30  ;;  %s575_s23 = sshll.u32 %s733_s10, 4  ;;  %s576_s23 = int_to_ptr.vmem [resolvable:$false] %s575_s23 }
  0x2f   : > { %s577_s6 = scalar_lea.vmem %s576_s23, 256  ;;  %p578_p9 = scmp.lt.s32.totalorder %s847_s11, %s576_s23 }
  0x30   : > { %p573_p3 = pnand %p571_p1, %p855_p2  ;;  %p579_p8 = scmp.lt.s32.totalorder %s577_s6, %s570_s30 }
  0x32   : > { %p574_p11 = pneg %p573_p3  ;;  %p580_p5 = por %p579_p8, %p578_p9 }
  0x34   : > { %p581_p6 = pnand %p580_p5, %p574_p11 }
  0x36   : > { %584 = shalt.err (!%p581_p6)
}
  0x37   : > { %491 = dma.hbm_to_vmem [thread:$0]  (!%p836_p0), %s845_s9, 128, %s847_s11, %s849_s19  }
  0x38   : > { %s209_s21 = scalar_lea.vmem [#allocation7], %s471_s29  ;;  %p466_p12 = scmp.ge.s32.totalorder %s731_s17, 1 }
  0x39   : > { %s217_s5 = sshll.u32 %s209_s21, 4  ;;  %p225_p8 = scmp.lt.s32.totalorder %s731_s17, 3  ;;  %s882_s5 = int_to_ptr.vmem [resolvable:$true] %s217_s5 }
  0x3a   : > { %s472_s8 = smul.u32 384, %s727_s16  ;;  %s168_s30 = scalar_lea.vmem [#allocation2], %s471_s29 }
  0x3b   : > { %p885_p9 = pnand %p466_p12, %p225_p8  ;;  %s176_s10 = sshll.u32 %s168_s30, 4  ;;  %s897_s10 = int_to_ptr.vmem [resolvable:$true] %s176_s10 }
  0x3c   : > { %s895_s9 = scalar_lea.hbm %s1028_s0, %s472_s8  ;;  %s902_s1 = scalar_lea.hbm %s1030_s2, %s472_s8 }
  0x3d   : > { %s1047_s7 = scalar_select %p885_p9, 1, 0 }
  0x3e   : > { %s165_s20 = scalar_lea.sflag [#allocation3], %s830_s28  ;;  %s585_s16 = scalar_lea.hbm %s895_s9, 384 }
  0x3f   : > { %p586_p11 = scmp.ne.s32.totalorder %s895_s9, %s585_s16  ;;  %s590_s23 = scalar_lea.hbm %s1028_s0, 768 }
  0x40   : > { %p591_p10 = scmp.lt.u32.totalorder %s895_s9, %s1028_s0  ;;  %p592_p13 = scmp.lt.u32.totalorder %s590_s23, %s585_s16 }
  0x41   : > { %p588_p4 = pnand %p586_p11, %p855_p2  ;;  %p594_p3 = scmp.lt.u32.totalorder %s585_s16, %s895_s9 }
  0x42   : > { %p593_p1 = por %p592_p13, %p591_p10 }
  0x43   : > { %p589_p7 = pneg %p588_p4 }
  0x44   : > { %p595_p5 = por %p594_p3, %p593_p1 }
  0x46   : > { %p596_p6 = pnand %p595_p5, %p589_p7 }
  0x48   : > { %599 = shalt.err (!%p596_p6)
}
  0x49   : > { %s600_s8 = scalar_lea.vmem %s897_s10, 384  ;;  %s734_s11 = smov [#allocation2]  }
  0x4a   : > { %p601_p12 = scmp.ne.s32.totalorder %s897_s10, %s600_s8  ;;  %s605_s21 = sshll.u32 %s734_s11, 4  ;;  %s606_s21 = int_to_ptr.vmem [resolvable:$false] %s605_s21 }
  0x4b   : > { %s607_s26 = scalar_lea.vmem %s606_s21, 768  ;;  %p608_p4 = scmp.lt.s32.totalorder %s897_s10, %s606_s21 }
  0x4c   : > { %p603_p8 = pnand %p601_p12, %p855_p2  ;;  %p609_p9 = scmp.lt.s32.totalorder %s607_s26, %s600_s8 }
  0x4e   : > { %p604_p11 = pneg %p603_p8  ;;  %p610_p10 = por %p609_p9, %p608_p4 }
  0x50   : > { %p611_p13 = pnand %p610_p10, %p604_p11 }
  0x52   : > { %614 = shalt.err (!%p611_p13)
}
  0x53   : > { %s735_s16 = smov 128   ;;  %s736_s29 = smov 8  }
  0x54   : > { %488 = dma.hbm_to_vmem [thread:$0]  (!%p836_p0), %s895_s9, 384, %s897_s10, %s165_s20, %s735_s16, %s735_s16, %s736_s29  }
  0x55   : > { %s615_s30 = scalar_lea.hbm %s902_s1, 384  ;;  %s620_s8 = scalar_lea.hbm %s1030_s2, 768 }
  0x56   : > { %p616_p9 = scmp.ne.s32.totalorder %s902_s1, %s615_s30  ;;  %p621_p3 = scmp.lt.u32.totalorder %s902_s1, %s1030_s2 }
  0x57   : > { %p622_p5 = scmp.lt.u32.totalorder %s620_s8, %s615_s30  ;;  %p624_p12 = scmp.lt.u32.totalorder %s615_s30, %s902_s1 }
  0x58   : > { %p618_p7 = pnand %p616_p9, %p855_p2 }
  0x59   : > { %p623_p6 = por %p622_p5, %p621_p3 }
  0x5a   : > { %p619_p1 = pneg %p618_p7 }
  0x5b   : > { %p625_p8 = por %p624_p12, %p623_p6 }
  0x5d   : > { %p626_p11 = pnand %p625_p8, %p619_p1 }
  0x5f   : > { %629 = shalt.err (!%p626_p11)
}
  0x60   : > { %s630_s20 = scalar_lea.vmem %s882_s5, 384  ;;  %s737_s28 = smov [#allocation7]  }
  0x61   : > { %p631_p4 = scmp.ne.s32.totalorder %s882_s5, %s630_s20  ;;  %s635_s10 = sshll.u32 %s737_s28, 4  ;;  %s636_s10 = int_to_ptr.vmem [resolvable:$false] %s635_s10 }
  0x62   : > { %s637_s9 = scalar_lea.vmem %s636_s10, 768  ;;  %p638_p9 = scmp.lt.s32.totalorder %s882_s5, %s636_s10 }
  0x63   : > { %p633_p10 = pnand %p631_p4, %p855_p2  ;;  %p639_p7 = scmp.lt.s32.totalorder %s637_s9, %s630_s20 }
  0x65   : > { %p634_p13 = pneg %p633_p10  ;;  %p640_p3 = por %p639_p7, %p638_p9 }
  0x67   : > { %p641_p5 = pnand %p640_p3, %p634_p13 }
  0x69   : > { %644 = shalt.err (!%p641_p5)
}
  0x6a   : > { %494 = dma.hbm_to_vmem [thread:$0]  (!%p836_p0), %s902_s1, 384, %s882_s5, %s849_s19, %s735_s16, %s735_s16, %s736_s29  }
  0x6b   : > { %p1048_p2 = scmp.ne.s32.totalorder %s1047_s7, 0 }
  0x6c   : > { %s959_s22 = sand.u32 (!%p1048_p2), 1, %s715_s13   ;;  %p1049_p1 = scmp.ne.s32.totalorder (!%p1048_p2), %s1040_s24, 0 }
  0x6d   : > { %229 = sbr.rel (%p1048_p2) target bundleno = 154 (0x9a), region = 32  ;;  %s232_s30 = scalar_lea.sflag (!%p1048_p2), [#allocation3], %s959_s22 }
  0x6e   : > { %s475_s26 = smul.u32 (!%p1048_p2), 24, %s959_s22 }
  0x70   : > { %s235_s23 = scalar_lea.vmem (!%p1048_p2), [#allocation2], %s475_s26 }
  0x74   : > { %698 = dma.done.wait (%p1049_p1), %s232_s30, 384  }
  0x75   : > { %700 = vsyncadd (%p1049_p1), %s232_s30, 4294966912  ;;  %s240_s1 = sand.u32 1, %s792_s18   ;;  %s467_s4 = sshll.u32 %s959_s22, 3 }
  0x76   : > { %s241_s19 = scalar_lea.sflag [#allocation6], %s240_s1  ;;  %s244_s5 = scalar_lea.vmem [#allocation5], %s467_s4 }
  0x77   : > { %702 = dma.done.wait (%p1049_p1), %s241_s19, 512  }
  0x78   : > { %704 = vsyncadd (%p1049_p1), %s241_s19, 4294966784  ;;  %v286_v0 = vld [vmem:[%s244_s5] sm:$0xff]  ;;  %s253_s7 = scalar_lea.vmem [#allocation7], %s475_s26  ;;  %v292_v5 = vld [vmem:[%s235_s23 + $0x8] sm:$0xff]  ;;  %s285_s18 = scalar_lea.vmem [#allocation8], %s475_s26 }
  0x79   : > { %v287_v1 = vmul.f32 %v286_v0, %v286_v0  ;;  %v291_v3 = vld [vmem:[%s235_s23] sm:$0xff]  ;;  %v298_v6 = vld [vmem:[%s253_s7 + $0x8] sm:$0xff]  ;;  %v293_v7 = vld [vmem:[%s235_s23 + $0x10] sm:$0xff]  ;;  %v295_v11 = vmul.f32 %v292_v5, %v286_v0  ;;  %s327_s24 = sshll.u32 %s285_s18, 4  ;;  %s476_s16 = smul.u32 384, %s723_s15  ;;  %s974_s24 = int_to_ptr.vmem [resolvable:$true] %s327_s24 }
  0x7a   : > { %v297_v4 = vld [vmem:[%s253_s7] sm:$0xff]  ;;  %v299_v8 = vld [vmem:[%s253_s7 + $0x10] sm:$0xff]  ;;  %v294_v9 = vmul.f32 %v291_v3, %v286_v0  ;;  %v301_v12 = vmul.f32 0.5, %v298_v6  ;;  %v296_v13 = vmul.f32 %v293_v7, %v286_v0  ;;  %s313_s11 = scalar_lea.sflag [#allocation4], %s959_s22  ;;  %s645_s21 = scalar_lea.vmem %s974_s24, 384 }
  0x7b   : > { %v288_v2 = vadd.f32 0.5, %v287_v1  ;;  %v300_v10 = vmul.f32 0.5, %v297_v4  ;;  %v302_v14 = vmul.f32 0.5, %v299_v8  ;;  %s979_s8 = scalar_lea.hbm %s1031_s3, %s476_s16  ;;  %p646_p0 = scmp.ne.s32.totalorder %s974_s24, %s645_s21 }
  0x7c   : > { %v304_v16 = vadd.f32 %v301_v12, %v295_v11  ;;  %p1050_p6 = scmp.ne.s32.totalorder %s1041_s25, 0  ;;  %s738_s15 = smov [#allocation8]  }
  0x7d   : > { %553 = vrcp.f32 %v288_v2  ;;  %v303_v15 = vadd.f32 %v300_v10, %v294_v9  ;;  %v305_v17 = vadd.f32 %v302_v14, %v296_v13  ;;  %s649_s20 = sshll.u32 %s738_s15, 4  ;;  %s650_s20 = int_to_ptr.vmem [resolvable:$false] %s649_s20 }
  0x7e   : > { %p647_p12 = pnand %p646_p0, %p1050_p6  ;;  %s651_s28 = scalar_lea.vmem %s650_s20, 768 }
  0x7f   : > { %p652_p11 = scmp.lt.s32.totalorder %s974_s24, %s650_s20  ;;  %p653_p4 = scmp.lt.s32.totalorder %s651_s28, %s645_s21 }
  0x80   : > { %p648_p8 = pneg %p647_p12 }
  0x81   : > { %p654_p10 = por %p653_p4, %p652_p11 }
  0x83   : > { %p655_p13 = pnand %p654_p10, %p648_p8 }
  0x87   : > { %v554_v18 = vpop.eup %553 }
  0x88   : > { %v306_v19 = vmul.f32 %v554_v18, %v303_v15  ;;  %v307_v20 = vmul.f32 %v554_v18, %v304_v16  ;;  %v308_v21 = vmul.f32 %v554_v18, %v305_v17 }
  0x8a   : > { %309 = vst [vmem:[%s285_s18] sm:$0xff] %v306_v19  ;;  %310 = vst [vmem:[%s285_s18 + $0x8] sm:$0xff] %v307_v20 }
  0x8b   : > { %311 = vst [vmem:[%s285_s18 + $0x10] sm:$0xff] %v308_v21 }
  0x8c   : > { %658 = shalt.err (!%p655_p13)
}
  0x8d   : > { %s659_s10 = scalar_lea.hbm %s979_s8, 384  ;;  %s663_s30 = scalar_lea.hbm %s1031_s3, 768 }
  0x8e   : > { %p660_p9 = scmp.ne.s32.totalorder %s979_s8, %s659_s10  ;;  %p664_p5 = scmp.lt.u32.totalorder %s979_s8, %s1031_s3 }
  0x8f   : > { %p665_p2 = scmp.lt.u32.totalorder %s663_s30, %s659_s10  ;;  %p667_p0 = scmp.lt.u32.totalorder %s659_s10, %s979_s8 }
  0x90   : > { %p661_p7 = pnand %p660_p9, %p1050_p6 }
  0x91   : > { %p666_p1 = por %p665_p2, %p664_p5 }
  0x92   : > { %p662_p3 = pneg %p661_p7 }
  0x93   : > { %p668_p12 = por %p667_p0, %p666_p1 }
  0x95   : > { %p669_p8 = pnand %p668_p12, %p662_p3 }
  0x97   : > { %672 = shalt.err (!%p669_p8)
}
  0x98   : > { %s739_s4 = smov 128   ;;  %s740_s19 = smov 8  }
  0x99   : > { %483 = dma.vmem_to_hbm [thread:$0]  (%p1050_p6), %s974_s24, 384, %s979_s8, %s313_s11, %s739_s4, %s739_s4, %s740_s19  }
  0x9a PF: > { %s342_s5 = sand.u32 1, %s711_s12   ;;  %p1051_p11 = scmp.ne.s32.totalorder %s1043_s27, 0 }
  0x9b   : > { %p1052_p4 = scmp.ge.s32.totalorder %s731_s17, 2  ;;  %s343_s7 = scalar_lea.sflag [#allocation4], %s342_s5 }
  0x9d   : > { %p496_p10 = pnand %p1052_p4, %p1051_p11 }
  0x9f   : > { %706 = dma.done.wait (!%p496_p10), %s343_s7, 384  }
  0xa0   : > { %708 = vsyncadd (!%p496_p10), %s343_s7, 4294966912  ;;  %s22_s17 = sadd.s32 1, %s731_s17   ;;  %s1053_s18 = sld [smem:[#allocation14_spill]] }
  0xa1   : > { %p19_p13 = scmp.ge.s32.totalorder %s22_s17, 4   ;;  %s1054_s15 = sld [smem:[#allocation12_spill]] }
  0xa2   : > { %s1055_s16 = sld [smem:[#allocation13_spill]]  ;;  %s1056_s12 = smov %s715_s13 }
  0xa3   : > { %s1057_s13 = smov %s719_s14  ;;  %21 = sbr.rel (!%p19_p13) target bundleno = 10 (0xa), region = 101 }
  0xa6   : > { %s1058_s14 = smov %s1053_s18 }
  0xaa   :  { %348 = vsyncpa [#allocation3], 1 }
  0xab   :  { %350 = vsyncpa [#allocation3 + $0x1], 1 }
  0xac   :  { %351 = vsyncpa [#allocation6], 1 }
  0xad   :  { %353 = vsyncpa [#allocation6 + $0x1], 1 }
  0xae   :  { %354 = vsyncpa [#allocation4], 1 }
  0xaf   :  { %356 = vsyncpa [#allocation4 + $0x1], 1 }

</bundles_post_ra>
